<compile_context>
chip_gen: v7x
topology: tpu7x:2x2x1
jax: 0.10.0
libtpu: 0.0.40
codegen_flags: <defaults>
</compile_context>

<pallas_src>
import math
import jax
import jax.numpy as jnp
from jax.experimental import pallas as pl
from jax.experimental.pallas import tpu as pltpu

# ----- model config (small, consistent with the module's forward) -----
N, L, D, H, EXP = 2, 8, 32, 4, 4          # batch, seq, d_model, n_heads, exp_factor
DV = D // H                               # per-head dim
DH = D * EXP                              # feed-forward hidden dim
VOCAB = 64                                # vocab_size
MAXLEN = 16                               # max_length (positional table rows)
LN_EPS = 1e-5                             # torch LayerNorm default
NEG_BIG = -1e30                           # finite "masked" bias (avoids -inf NaNs)
SCALE = 1.0 / math.sqrt(float(D))         # reference scales scores by sqrt(d_model)

# packed-parameter slab layout (all offsets multiples of 8 sublanes)
POS_OFF = VOCAB                           # 64  : pos_emb[:L]
VEC_OFF = VOCAB + L                       # 72  : 6 packed (D,) vectors
W2_OFF = 80                               # 80  : W2 (DH, D)
PACKA_ROWS = W2_OFF + DH                  # 208


def encoder_kernel(ids_ref, bias_ref, packA_ref, wfc_ref, packB_ref, out_ref):
    bl = out_ref.shape[0]                 # folded rows = N * L
    nb = bl // L                          # batch items (static)

    # ---------- unpack parameters (static slices of VMEM refs) ----------
    tok_emb = packA_ref[0:VOCAB, :]                               # (VOCAB, D)
    pos = packA_ref[POS_OFF:POS_OFF + L, :]                       # (L, D)
    bfc = packA_ref[VEC_OFF + 0:VEC_OFF + 1, :]
    g1 = packA_ref[VEC_OFF + 1:VEC_OFF + 2, :]
    be1 = packA_ref[VEC_OFF + 2:VEC_OFF + 3, :]
    b2 = packA_ref[VEC_OFF + 3:VEC_OFF + 4, :]
    g2 = packA_ref[VEC_OFF + 4:VEC_OFF + 5, :]
    be2 = packA_ref[VEC_OFF + 5:VEC_OFF + 6, :]
    w2 = packA_ref[W2_OFF:W2_OFF + DH, :]                         # (DH, D)
    w1 = packB_ref[0:D, :]                                        # (D, DH)
    b1 = packB_ref[D:D + 1, :]                                    # (1, DH)
    wfc_h = wfc_ref[...]                                          # (H, DV, D)

    # ---------- token + positional embedding (Encoder.dropout = identity) ----------
    ids = ids_ref[...]                                            # (bl, 1) int32
    iota_v = jax.lax.broadcasted_iota(jnp.int32, (bl, VOCAB), 1)
    onehot = (ids == iota_v).astype(jnp.float32)                  # (bl, VOCAB)
    emb = jnp.dot(onehot, tok_emb,
                  preferred_element_type=jnp.float32)             # (bl, D)
    x_emb = emb + jnp.tile(pos, (nb, 1))                          # positions = arange(L)

    # ---------- multi-head self-attention (q = k = v = x_emb), whole batch folded ----
    # bias_ref is block-diagonal: 0 / -1e30 causal mask on same-batch blocks,
    # -1e30 everywhere across batches -> folding the batch into the row axis is exact.
    xh = jnp.stack([x_emb[:, h * DV:(h + 1) * DV] for h in range(H)], axis=0)  # (H, bl, DV)
    s = jnp.einsum('hqd,hkd->hqk', xh, xh,
                   preferred_element_type=jnp.float32)            # (H, bl, bl)
    s = s * SCALE + bias_ref[...]                                 # bias broadcasts over heads
    m = jnp.max(s, axis=-1, keepdims=True)
    p = jnp.exp(s - m)
    denom = jnp.sum(p, axis=-1, keepdims=True)
    p = p * pl.reciprocal(denom, approx=False)
    ctx = jnp.einsum('hqk,hkd->hqd', p, xh,
                     preferred_element_type=jnp.float32)          # (H, bl, DV)
    # fc projection folded per head: sum_h ctx_h @ Wfc[h*DV:(h+1)*DV, :]
    part = jnp.einsum('hqd,hde->hqe', ctx, wfc_h,
                      preferred_element_type=jnp.float32)         # (H, bl, D)
    attn = jnp.sum(part, axis=0) + bfc                            # (bl, D)

    # ---------- residual + LayerNorm1 (dropout = identity) ----------
    x = attn + x_emb
    mu = jnp.mean(x, axis=-1, keepdims=True)
    var = jnp.mean((x - mu) ** 2, axis=-1, keepdims=True)         # biased variance
    x1 = (x - mu) * jax.lax.rsqrt(var + LN_EPS) * g1 + be1

    # ---------- feed forward: Linear -> ReLU -> Linear ----------
    h1 = jnp.maximum(
        jnp.dot(x1, w1, preferred_element_type=jnp.float32) + b1, 0.0)
    ff = jnp.dot(h1, w2, preferred_element_type=jnp.float32) + b2

    # ---------- residual + LayerNorm2 (dropout = identity) ----------
    y = ff + x1
    mu2 = jnp.mean(y, axis=-1, keepdims=True)
    var2 = jnp.mean((y - mu2) ** 2, axis=-1, keepdims=True)
    x2 = (y - mu2) * jax.lax.rsqrt(var2 + LN_EPS) * g2 + be2

    out_ref[...] = x2.astype(out_ref.dtype)


def encoder_forward(token_ids, mask, params):
    # ----- wrapper-side layout plumbing (free in XLA land) -----
    ids_col = token_ids.reshape(N * L, 1).astype(jnp.int32)          # (N*L, 1)

    # additive attention bias, block-diagonally expanded so the whole batch folds
    # into a single (N*L, N*L) attention problem.
    per = jnp.where(mask[:, 0, :, :] == 0, NEG_BIG, 0.0).astype(jnp.float32)   # (N, L, L)
    same_batch = (jnp.arange(N)[:, None, None, None] ==
                  jnp.arange(N)[None, None, :, None])                          # (N,1,N,1)
    bias_full = jnp.where(same_batch, per[:, :, None, :], NEG_BIG)
    bias_full = bias_full.reshape(N * L, N * L).astype(jnp.float32)            # (N*L, N*L)

    # packed parameter slabs
    vec = jnp.stack([params["bfc"], params["g1"], params["be1"],
                     params["b2"], params["g2"], params["be2"]], axis=0)        # (6, D)
    packA = jnp.zeros((PACKA_ROWS, D), jnp.float32)
    packA = packA.at[0:VOCAB].set(params["tok_emb"])
    packA = packA.at[POS_OFF:POS_OFF + L].set(params["pos_emb"][:L])
    packA = packA.at[VEC_OFF:VEC_OFF + 6].set(vec)
    packA = packA.at[W2_OFF:W2_OFF + DH].set(params["w2"])
    wfc_h = params["wfc"].reshape(H, DV, D)                                     # per-head fc weight
    packB = jnp.concatenate([params["w1"], params["b1"].reshape(1, DH)], axis=0)  # (D+1, DH)

    def full_spec(a):
        nd = a.ndim
        return pl.BlockSpec(a.shape, lambda n, _nd=nd: (0,) * _nd)

    out = pl.pallas_call(
        encoder_kernel,
        out_shape=jax.ShapeDtypeStruct((N * L, D), jnp.float32),
        grid=(1,),
        in_specs=[
            full_spec(ids_col),        # token ids
            full_spec(bias_full),      # block-diagonal additive mask bias
            full_spec(packA),          # tok_emb | pos_emb[:L] | 6 vectors | W2
            full_spec(wfc_h),          # per-head fc weight (H, DV, D)
            full_spec(packB),          # W1 | b1
        ],
        out_specs=pl.BlockSpec((N * L, D), lambda n: (0, 0)),
        compiler_params=pltpu.CompilerParams(dimension_semantics=("arbitrary",)),
    )(ids_col, bias_full, packA, wfc_h, packB)

    return out.reshape(N, L, D)


def reference(token_ids, mask, p):
    """Pure-JAX replica of the PyTorch Encoder forward (for verification)."""
    emb = p["tok_emb"][token_ids] + p["pos_emb"][:L][None, :, :]
    q = k = v = emb
    q4 = q.reshape(N, L, H, DV)
    k4 = k.reshape(N, L, H, DV)
    v4 = v.reshape(N, L, H, DV)
    energy = jnp.einsum('nqhd,nkhd->nhqk', q4, k4)
    energy = jnp.where(mask == 0, -jnp.inf, energy)
    attn = jax.nn.softmax(energy / math.sqrt(D), axis=-1)
    ctx = jnp.einsum('nhqk,nkhd->nqhd', attn, v4).reshape(N, L, D)
    attn_out = ctx @ p["wfc"] + p["bfc"]

    def ln(x, g, b):
        mu = jnp.mean(x, axis=-1, keepdims=True)
        var = jnp.mean((x - mu) ** 2, axis=-1, keepdims=True)
        return (x - mu) * jax.lax.rsqrt(var + LN_EPS) * g + b

    x1 = ln(attn_out + q, p["g1"], p["be1"])
    ff = jnp.maximum(x1 @ p["w1"] + p["b1"], 0.0) @ p["w2"] + p["b2"]
    return ln(ff + x1, p["g2"], p["be2"])


if __name__ == "__main__":
    key = jax.random.PRNGKey(0)
    ks = jax.random.split(key, 13)

    token_ids = jax.random.randint(ks[0], (N, L), 0, VOCAB, dtype=jnp.int32)
    # causal mask, broadcast over heads (shape (N, 1, L, L), 0 = masked position)
    mask = jnp.broadcast_to(
        jnp.tril(jnp.ones((L, L), jnp.int32))[None, None], (N, 1, L, L)
    ).astype(jnp.int32)

    params = {
        "tok_emb": jax.random.normal(ks[1], (VOCAB, D), jnp.float32),
        "pos_emb": jax.random.normal(ks[2], (MAXLEN, D), jnp.float32),
        "wfc": 0.05 * jax.random.normal(ks[3], (D, D), jnp.float32),
        "bfc": 0.05 * jax.random.normal(ks[4], (D,), jnp.float32),
        "g1": 1.0 + 0.1 * jax.random.normal(ks[5], (D,), jnp.float32),
        "be1": 0.1 * jax.random.normal(ks[6], (D,), jnp.float32),
        "w1": 0.05 * jax.random.normal(ks[7], (D, DH), jnp.float32),
        "b1": 0.05 * jax.random.normal(ks[8], (DH,), jnp.float32),
        "w2": 0.05 * jax.random.normal(ks[9], (DH, D), jnp.float32),
        "b2": 0.05 * jax.random.normal(ks[10], (D,), jnp.float32),
        "g2": 1.0 + 0.1 * jax.random.normal(ks[11], (D,), jnp.float32),
        "be2": 0.1 * jax.random.normal(ks[12], (D,), jnp.float32),
    }

    out = jax.block_until_ready(encoder_forward(token_ids, mask, params))
    ref = jax.block_until_ready(reference(token_ids, mask, params))

    assert out.shape == (N, L, D)
    max_err = jnp.max(jnp.abs(out - ref))
    assert jnp.allclose(out, ref, atol=1e-4, rtol=1e-4), f"max abs err = {max_err}"

    print("KERNEL_OK")
</pallas_src>

<mosaic_0001>
module attributes {stable_mosaic.version = 11 : i64} {
  func.func @encoder_kernel(%arg0: i32, %arg1: memref<16x1xi32, #tpu.memory_space<vmem>>, %arg2: memref<16x16xf32, #tpu.memory_space<vmem>>, %arg3: memref<208x32xf32, #tpu.memory_space<vmem>>, %arg4: memref<4x8x32xf32, #tpu.memory_space<vmem>>, %arg5: memref<33x128xf32, #tpu.memory_space<vmem>>, %arg6: memref<16x32xf32, #tpu.memory_space<vmem>>) attributes {dimension_semantics = [#tpu.dimension_semantics<arbitrary>], iteration_bounds = array<i64: 1>, scalar_prefetch = 0 : i64, scratch_operands = 0 : i64, tpu.core_type = #tpu.core_type<tc>, window_params = [{pipeline_mode = #tpu.pipeline_mode<synchronous>, transform_indices = @transform_0, window_bounds = array<i64: 16, 1>}, {pipeline_mode = #tpu.pipeline_mode<synchronous>, transform_indices = @transform_1, window_bounds = array<i64: 16, 16>}, {pipeline_mode = #tpu.pipeline_mode<synchronous>, transform_indices = @transform_2, window_bounds = array<i64: 208, 32>}, {pipeline_mode = #tpu.pipeline_mode<synchronous>, transform_indices = @transform_3, window_bounds = array<i64: 4, 8, 32>}, {pipeline_mode = #tpu.pipeline_mode<synchronous>, transform_indices = @transform_4, window_bounds = array<i64: 33, 128>}, {pipeline_mode = #tpu.pipeline_mode<synchronous>, transform_indices = @transform_5, window_bounds = array<i64: 16, 32>}]} {
    %c0 = arith.constant 0 : index
    %c0_0 = arith.constant 0 : index
    %0 = vector.load %arg3[%c0, %c0_0] : memref<208x32xf32, #tpu.memory_space<vmem>>, vector<64x32xf32>
    %c64 = arith.constant 64 : index
    %c0_1 = arith.constant 0 : index
    %1 = vector.load %arg3[%c64, %c0_1] : memref<208x32xf32, #tpu.memory_space<vmem>>, vector<8x32xf32>
    %c72 = arith.constant 72 : index
    %c0_2 = arith.constant 0 : index
    %2 = vector.load %arg3[%c72, %c0_2] : memref<208x32xf32, #tpu.memory_space<vmem>>, vector<1x32xf32>
    %c73 = arith.constant 73 : index
    %c0_3 = arith.constant 0 : index
    %3 = vector.load %arg3[%c73, %c0_3] : memref<208x32xf32, #tpu.memory_space<vmem>>, vector<1x32xf32>
    %c74 = arith.constant 74 : index
    %c0_4 = arith.constant 0 : index
    %4 = vector.load %arg3[%c74, %c0_4] : memref<208x32xf32, #tpu.memory_space<vmem>>, vector<1x32xf32>
    %c75 = arith.constant 75 : index
    %c0_5 = arith.constant 0 : index
    %5 = vector.load %arg3[%c75, %c0_5] : memref<208x32xf32, #tpu.memory_space<vmem>>, vector<1x32xf32>
    %c76 = arith.constant 76 : index
    %c0_6 = arith.constant 0 : index
    %6 = vector.load %arg3[%c76, %c0_6] : memref<208x32xf32, #tpu.memory_space<vmem>>, vector<1x32xf32>
    %c77 = arith.constant 77 : index
    %c0_7 = arith.constant 0 : index
    %7 = vector.load %arg3[%c77, %c0_7] : memref<208x32xf32, #tpu.memory_space<vmem>>, vector<1x32xf32>
    %c80 = arith.constant 80 : index
    %c0_8 = arith.constant 0 : index
    %8 = vector.load %arg3[%c80, %c0_8] : memref<208x32xf32, #tpu.memory_space<vmem>>, vector<128x32xf32>
    %c0_9 = arith.constant 0 : index
    %c0_10 = arith.constant 0 : index
    %9 = vector.load %arg5[%c0_9, %c0_10] : memref<33x128xf32, #tpu.memory_space<vmem>>, vector<32x128xf32>
    %c32 = arith.constant 32 : index
    %c0_11 = arith.constant 0 : index
    %10 = vector.load %arg5[%c32, %c0_11] : memref<33x128xf32, #tpu.memory_space<vmem>>, vector<1x128xf32>
    %c0_12 = arith.constant 0 : index
    %c0_13 = arith.constant 0 : index
    %c0_14 = arith.constant 0 : index
    %11 = vector.load %arg4[%c0_12, %c0_13, %c0_14] : memref<4x8x32xf32, #tpu.memory_space<vmem>>, vector<4x8x32xf32>
    %c0_15 = arith.constant 0 : index
    %c0_16 = arith.constant 0 : index
    %12 = vector.load %arg1[%c0_15, %c0_16] : memref<16x1xi32, #tpu.memory_space<vmem>>, vector<16x1xi32>
    %13 = tpu.iota {dimensions = array<i32: 1>} : vector<16x64xi32>
    %14 = vector.broadcast %12 : vector<16x1xi32> to vector<16x64xi32>
    %15 = arith.cmpi eq, %14, %13 : vector<16x64xi32>
    %16 = arith.extui %15 : vector<16x64xi1> to vector<16x64xi32>
    %17 = arith.sitofp %16 : vector<16x64xi32> to vector<16x64xf32>
    %cst = arith.constant dense<0.000000e+00> : vector<16x32xf32>
    %18 = tpu.matmul %17, %0, %cst {dimension_numbers = #tpu.dot_dimension_numbers<[1], [0], [0], [1], [0, 0, 1, 1], [], []>} : vector<16x64xf32>, vector<64x32xf32>, vector<16x32xf32> -> vector<16x32xf32>
    %19 = tpu.concatenate %1, %1 in 0 : vector<8x32xf32>, vector<8x32xf32> -> vector<16x32xf32>
    %20 = arith.addf %18, %19 : vector<16x32xf32>
    %21 = vector.extract_strided_slice %20 {offsets = [0, 0], sizes = [16, 8], strides = [1, 1]} : vector<16x32xf32> to vector<16x8xf32>
    %22 = vector.extract_strided_slice %20 {offsets = [0, 8], sizes = [16, 8], strides = [1, 1]} : vector<16x32xf32> to vector<16x8xf32>
    %23 = vector.extract_strided_slice %20 {offsets = [0, 16], sizes = [16, 8], strides = [1, 1]} : vector<16x32xf32> to vector<16x8xf32>
    %24 = vector.extract_strided_slice %20 {offsets = [0, 24], sizes = [16, 8], strides = [1, 1]} : vector<16x32xf32> to vector<16x8xf32>
    %25 = vector.shape_cast %21 : vector<16x8xf32> to vector<1x16x8xf32>
    %26 = vector.shape_cast %22 : vector<16x8xf32> to vector<1x16x8xf32>
    %27 = vector.shape_cast %23 : vector<16x8xf32> to vector<1x16x8xf32>
    %28 = vector.shape_cast %24 : vector<16x8xf32> to vector<1x16x8xf32>
    %29 = tpu.concatenate %25, %26, %27, %28 in 0 : vector<1x16x8xf32>, vector<1x16x8xf32>, vector<1x16x8xf32>, vector<1x16x8xf32> -> vector<4x16x8xf32>
    "tpu.trace_start"() <{level = 10 : i32, message = "hqd,hkd->hqk"}> : () -> ()
    %cst_17 = arith.constant dense<0.000000e+00> : vector<4x16x16xf32>
    %30 = tpu.matmul %29, %29, %cst_17 {dimension_numbers = #tpu.dot_dimension_numbers<[2], [2], [1], [1], [0, 0, 0, 1, 1, 1], [0], [0]>} : vector<4x16x8xf32>, vector<4x16x8xf32>, vector<4x16x16xf32> -> vector<4x16x16xf32>
    "tpu.trace_stop"() : () -> ()
    %cst_18 = arith.constant 0.176776692 : f32
    %31 = vector.broadcast %cst_18 : f32 to vector<4x16x16xf32>
    %32 = arith.mulf %30, %31 : vector<4x16x16xf32>
    %c0_19 = arith.constant 0 : index
    %c0_20 = arith.constant 0 : index
    %33 = vector.load %arg2[%c0_19, %c0_20] : memref<16x16xf32, #tpu.memory_space<vmem>>, vector<16x16xf32>
    %34 = vector.shape_cast %33 : vector<16x16xf32> to vector<1x16x16xf32>
    %35 = vector.broadcast %34 : vector<1x16x16xf32> to vector<4x16x16xf32>
    %36 = arith.addf %32, %35 : vector<4x16x16xf32>
    %cst_21 = arith.constant dense<0xFF800000> : vector<4x16xf32>
    %37 = vector.multi_reduction <maximumf>, %36, %cst_21 [2] : vector<4x16x16xf32> to vector<4x16xf32>
    %38 = vector.shape_cast %37 : vector<4x16xf32> to vector<4x16x1xf32>
    %39 = vector.broadcast %38 : vector<4x16x1xf32> to vector<4x16x16xf32>
    %40 = arith.subf %36, %39 : vector<4x16x16xf32>
    %41 = math.exp %40 : vector<4x16x16xf32>
    %cst_22 = arith.constant dense<0.000000e+00> : vector<4x16xf32>
    %42 = vector.multi_reduction <add>, %41, %cst_22 [2] : vector<4x16x16xf32> to vector<4x16xf32>
    %43 = vector.shape_cast %42 : vector<4x16xf32> to vector<4x16x1xf32>
    %44 = tpu.reciprocal %43 : vector<4x16x1xf32> -> vector<4x16x1xf32>
    %45 = vector.broadcast %44 : vector<4x16x1xf32> to vector<4x16x16xf32>
    %46 = arith.mulf %41, %45 : vector<4x16x16xf32>
    "tpu.trace_start"() <{level = 10 : i32, message = "hqk,hkd->hqd"}> : () -> ()
    %cst_23 = arith.constant dense<0.000000e+00> : vector<4x16x8xf32>
    %47 = tpu.matmul %46, %29, %cst_23 {dimension_numbers = #tpu.dot_dimension_numbers<[2], [1], [1], [2], [0, 0, 0, 1, 1, 2], [0], [0]>} : vector<4x16x16xf32>, vector<4x16x8xf32>, vector<4x16x8xf32> -> vector<4x16x8xf32>
    "tpu.trace_stop"() : () -> ()
    "tpu.trace_start"() <{level = 10 : i32, message = "hqd,hde->hqe"}> : () -> ()
    %cst_24 = arith.constant dense<0.000000e+00> : vector<4x16x32xf32>
    %48 = tpu.matmul %47, %11, %cst_24 {dimension_numbers = #tpu.dot_dimension_numbers<[2], [1], [1], [2], [0, 0, 0, 1, 1, 2], [0], [0]>} : vector<4x16x8xf32>, vector<4x8x32xf32>, vector<4x16x32xf32> -> vector<4x16x32xf32>
    "tpu.trace_stop"() : () -> ()
    %cst_25 = arith.constant dense<0.000000e+00> : vector<16x32xf32>
    %49 = vector.multi_reduction <add>, %48, %cst_25 [0] : vector<4x16x32xf32> to vector<16x32xf32>
    %50 = vector.broadcast %2 : vector<1x32xf32> to vector<16x32xf32>
    %51 = arith.addf %49, %50 : vector<16x32xf32>
    %52 = arith.addf %51, %20 : vector<16x32xf32>
    %cst_26 = arith.constant dense<0.000000e+00> : vector<16xf32>
    %53 = vector.multi_reduction <add>, %52, %cst_26 [1] : vector<16x32xf32> to vector<16xf32>
    %54 = vector.shape_cast %53 : vector<16xf32> to vector<16x1xf32>
    %cst_27 = arith.constant 3.200000e+01 : f32
    %55 = vector.broadcast %cst_27 : f32 to vector<16x1xf32>
    %56 = arith.divf %54, %55 : vector<16x1xf32>
    %57 = vector.broadcast %56 : vector<16x1xf32> to vector<16x32xf32>
    %58 = arith.subf %52, %57 : vector<16x32xf32>
    %59 = arith.mulf %58, %58 : vector<16x32xf32>
    %cst_28 = arith.constant dense<0.000000e+00> : vector<16xf32>
    %60 = vector.multi_reduction <add>, %59, %cst_28 [1] : vector<16x32xf32> to vector<16xf32>
    %61 = vector.shape_cast %60 : vector<16xf32> to vector<16x1xf32>
    %cst_29 = arith.constant 3.200000e+01 : f32
    %62 = vector.broadcast %cst_29 : f32 to vector<16x1xf32>
    %63 = arith.divf %61, %62 : vector<16x1xf32>
    %64 = vector.broadcast %56 : vector<16x1xf32> to vector<16x32xf32>
    %65 = arith.subf %52, %64 : vector<16x32xf32>
    %cst_30 = arith.constant 9.99999974E-6 : f32
    %66 = vector.broadcast %cst_30 : f32 to vector<16x1xf32>
    %67 = arith.addf %63, %66 : vector<16x1xf32>
    %68 = math.rsqrt %67 : vector<16x1xf32>
    %69 = vector.broadcast %68 : vector<16x1xf32> to vector<16x32xf32>
    %70 = arith.mulf %65, %69 : vector<16x32xf32>
    %71 = vector.broadcast %3 : vector<1x32xf32> to vector<16x32xf32>
    %72 = arith.mulf %70, %71 : vector<16x32xf32>
    %73 = vector.broadcast %4 : vector<1x32xf32> to vector<16x32xf32>
    %74 = arith.addf %72, %73 : vector<16x32xf32>
    %cst_31 = arith.constant dense<0.000000e+00> : vector<16x128xf32>
    %75 = tpu.matmul %74, %9, %cst_31 {dimension_numbers = #tpu.dot_dimension_numbers<[1], [0], [0], [1], [0, 0, 1, 1], [], []>} : vector<16x32xf32>, vector<32x128xf32>, vector<16x128xf32> -> vector<16x128xf32>
    %76 = vector.broadcast %10 : vector<1x128xf32> to vector<16x128xf32>
    %77 = arith.addf %75, %76 : vector<16x128xf32>
    %cst_32 = arith.constant 0.000000e+00 : f32
    %78 = vector.broadcast %cst_32 : f32 to vector<16x128xf32>
    %79 = arith.maximumf %77, %78 : vector<16x128xf32>
    %cst_33 = arith.constant dense<0.000000e+00> : vector<16x32xf32>
    %80 = tpu.matmul %79, %8, %cst_33 {dimension_numbers = #tpu.dot_dimension_numbers<[1], [0], [0], [1], [0, 0, 1, 1], [], []>} : vector<16x128xf32>, vector<128x32xf32>, vector<16x32xf32> -> vector<16x32xf32>
    %81 = vector.broadcast %5 : vector<1x32xf32> to vector<16x32xf32>
    %82 = arith.addf %80, %81 : vector<16x32xf32>
    %83 = arith.addf %82, %74 : vector<16x32xf32>
    %cst_34 = arith.constant dense<0.000000e+00> : vector<16xf32>
    %84 = vector.multi_reduction <add>, %83, %cst_34 [1] : vector<16x32xf32> to vector<16xf32>
    %85 = vector.shape_cast %84 : vector<16xf32> to vector<16x1xf32>
    %cst_35 = arith.constant 3.200000e+01 : f32
    %86 = vector.broadcast %cst_35 : f32 to vector<16x1xf32>
    %87 = arith.divf %85, %86 : vector<16x1xf32>
    %88 = vector.broadcast %87 : vector<16x1xf32> to vector<16x32xf32>
    %89 = arith.subf %83, %88 : vector<16x32xf32>
    %90 = arith.mulf %89, %89 : vector<16x32xf32>
    %cst_36 = arith.constant dense<0.000000e+00> : vector<16xf32>
    %91 = vector.multi_reduction <add>, %90, %cst_36 [1] : vector<16x32xf32> to vector<16xf32>
    %92 = vector.shape_cast %91 : vector<16xf32> to vector<16x1xf32>
    %cst_37 = arith.constant 3.200000e+01 : f32
    %93 = vector.broadcast %cst_37 : f32 to vector<16x1xf32>
    %94 = arith.divf %92, %93 : vector<16x1xf32>
    %95 = vector.broadcast %87 : vector<16x1xf32> to vector<16x32xf32>
    %96 = arith.subf %83, %95 : vector<16x32xf32>
    %cst_38 = arith.constant 9.99999974E-6 : f32
    %97 = vector.broadcast %cst_38 : f32 to vector<16x1xf32>
    %98 = arith.addf %94, %97 : vector<16x1xf32>
    %99 = math.rsqrt %98 : vector<16x1xf32>
    %100 = vector.broadcast %99 : vector<16x1xf32> to vector<16x32xf32>
    %101 = arith.mulf %96, %100 : vector<16x32xf32>
    %102 = vector.broadcast %6 : vector<1x32xf32> to vector<16x32xf32>
    %103 = arith.mulf %101, %102 : vector<16x32xf32>
    %104 = vector.broadcast %7 : vector<1x32xf32> to vector<16x32xf32>
    %105 = arith.addf %103, %104 : vector<16x32xf32>
    %c0_39 = arith.constant 0 : index
    %c0_40 = arith.constant 0 : index
    %106 = vector.load %arg6[%c0_39, %c0_40] : memref<16x32xf32, #tpu.memory_space<vmem>>, vector<16x32xf32>
    tpu.vector_store %arg6[%c0_39, %c0_40], %105 {strides = array<i32>} : memref<16x32xf32, #tpu.memory_space<vmem>>, vector<16x32xf32>,
    return
  }
  func.func @transform_0(%arg0: i32) -> (i32, i32) {
    %c0_i32 = arith.constant 0 : i32
    %c0_i32_0 = arith.constant 0 : i32
    %c0_i32_1 = arith.constant 0 : i32
    return %c0_i32, %c0_i32_0 : i32, i32
  }
  func.func @transform_1(%arg0: i32) -> (i32, i32) {
    %c0_i32 = arith.constant 0 : i32
    %c0_i32_0 = arith.constant 0 : i32
    %c0_i32_1 = arith.constant 0 : i32
    return %c0_i32, %c0_i32_0 : i32, i32
  }
  func.func @transform_2(%arg0: i32) -> (i32, i32) {
    %c0_i32 = arith.constant 0 : i32
    %c0_i32_0 = arith.constant 0 : i32
    %c0_i32_1 = arith.constant 0 : i32
    return %c0_i32, %c0_i32_0 : i32, i32
  }
  func.func @transform_3(%arg0: i32) -> (i32, i32, i32) {
    %c0_i32 = arith.constant 0 : i32
    %c0_i32_0 = arith.constant 0 : i32
    %c0_i32_1 = arith.constant 0 : i32
    %c0_i32_2 = arith.constant 0 : i32
    return %c0_i32, %c0_i32_0, %c0_i32_1 : i32, i32, i32
  }
  func.func @transform_4(%arg0: i32) -> (i32, i32) {
    %c0_i32 = arith.constant 0 : i32
    %c0_i32_0 = arith.constant 0 : i32
    %c0_i32_1 = arith.constant 0 : i32
    return %c0_i32, %c0_i32_0 : i32, i32
  }
  func.func @transform_5(%arg0: i32) -> (i32, i32) {
    %c0_i32 = arith.constant 0 : i32
    %c0_i32_0 = arith.constant 0 : i32
    %c0_i32_1 = arith.constant 0 : i32
    return %c0_i32, %c0_i32_0 : i32, i32
  }
}

</mosaic_0001>

<bundles_post_ra>
// kernel: tpu_custom_call.1
= control target key start
LH: loop header
LB: loop body
LE: loop exit
PB: predicated region body
PF: predicated region fallthrough
CT: control target
= control target key end

     0   :  { %v1970_v2 = vmov 0   ;;  %s2272_s0 = inlined_call_operand.vmem [shape: s32[16,1], index: 0, kind: input, shape index: {}]   ;;  %s2273_s1 = inlined_call_operand.vmem [shape: f32[16,16], index: 1, kind: input, shape index: {}]   ;;  %s2274_s2 = inlined_call_operand.vmem [shape: f32[208,32], index: 2, kind: input, shape index: {}]   ;;  %s2275_s3 = inlined_call_operand.vmem [shape: f32[4,8,32], index: 3, kind: input, shape index: {}]   ;;  %s2276_s4 = inlined_call_operand.vmem [shape: f32[33,128], index: 4, kind: input, shape index: {}]   ;;  %s2277_s5 = inlined_call_operand.hbm [shape: f32[16,32], index: 5, kind: output, shape index: {}]  }
   0x1   :  { %v61_v0 = vld [vmem:[%s2272_s0] sm:$0xff]  ;;  %1905 = vset.pattern.permute.xlu0 %v1970_v2  ;;  %v22_v3 = vld [vmem:[%s2274_s2 + $0x8] sm:$0xff]  ;;  %v23_v4 = vld [vmem:[%s2274_s2 + $0x10] sm:$0xff] }
   0x2   :  { %v21_v1 = vld [vmem:[%s2274_s2] sm:$0xff]  ;;  %v24_v5 = vld [vmem:[%s2274_s2 + $0x18] sm:$0xff]  ;;  %66 = vperm.xlu0 %1905, %v61_v0   ;;  %v62_v6 = vld [vmem:[%s2272_s0 + $0x8] sm:$0xff] }
   0x3   :  { %v1801_v7 = vpack.c.bf16 %v22_v3, %v21_v1  ;;  %v1805_v8 = vpack.c.bf16 %v24_v5, %v23_v4  ;;  %v25_v9 = vld [vmem:[%s2274_s2 + $0x20] sm:$0xff]  ;;  %v26_v10 = vld [vmem:[%s2274_s2 + $0x28] sm:$0xff] }
   0x4   :  { %10 = vsyncpa [#allocation3], 0  ;;  %v1809_v11 = vpack.c.bf16 %v26_v10, %v25_v9  ;;  %v27_v12 = vld [vmem:[%s2274_s2 + $0x30] sm:$0xff]  ;;  %v28_v13 = vld [vmem:[%s2274_s2 + $0x38] sm:$0xff]  ;;  %v63_v15 = vlaneseq  ;;  %vm77_vm0 = vcmask 523264   ;;  %v1971_v18 = vmov 0.0  }
   0x5   :  { %1802 = vmatprep.subr.bf16.mxu0 %v1801_v7  ;;  %v1813_v14 = vpack.c.bf16 %v28_v13, %v27_v12  ;;  %v29_v22 = vld [vmem:[%s2274_s2 + $0x40] sm:$0xff]  ;;  %vm179_vm3 = vcmask 64512   ;;  %s1972_s14 = smov 120   ;;  %s1973_s15 = smov 112   ;;  %v505_v39 = vld [vmem:[%s2273_s1 + $0x8] sm:$0xff]  ;;  %vm514_vm5 = vcmask 130048  }
   0x6   :  { %1804 = vmatpush3.bf16.msra.mxu0 %v1801_v7  ;;  %69 = vperm.xlu0 %1905, %v62_v6   ;;  %v64_v16 = vand.u32 127, %v63_v15  ;;  %vm2048_vm4 = vmpackc.low %vm179_vm3, %vm179_vm3  ;;  %s1974_s16 = smov 104   ;;  %v504_v42 = vld [vmem:[%s2273_s1] sm:$0xff]  ;;  %vm1251_vm6 = vcmask 261120   ;;  %s1975_s25 = smov [#allocation2]  }
   0x7   :  { %1806 = vmatprep.subr.bf16.mxu0 %v1805_v8  ;;  %s1526_s26 = sshll.u32 %s1975_s25, 4  ;;  %s1527_s26 = int_to_ptr.vmem [resolvable:$true] %s1526_s26 }
   0x8   :  { %s1946_s27 = scalar_lea.vmem %s1527_s26, 256  ;;  %p1951_p1 = scmp.lt.s32.totalorder %s1527_s26, %s1527_s26 }
   0x9   :  { %p1947_p0 = scmp.ne.s32.totalorder %s1527_s26, %s1946_s27  ;;  %p1952_p2 = scmp.lt.s32.totalorder %s1946_s27, %s1946_s27 }
   0xa   :  { %1808 = vmatpush3.bf16.msra.mxu0 %v1805_v8 }
   0xb   :  { %1810 = vmatprep.subr.bf16.mxu0 %v1809_v11  ;;  %p1953_p3 = por %p1952_p2, %p1951_p1 }
   0xd   :  { %p1954_p4 = pnand %p1953_p3, %p1947_p0 }
   0xe   :  { %1812 = vmatpush3.bf16.msra.mxu0 %v1809_v11 }
   0xf   :  { %1814 = vmatprep.subr.bf16.mxu0 %v1813_v14 }
  0x12   :  { %1816 = vmatpush3.bf16.msra.mxu0 %v1813_v14 }
  0x81   :  { %v67_v17 = vpop.permute.xlu0 %66 }
  0x82   :  { %vm71_vm1 = vcmp.eq.s32.totalorder %v67_v17, %v64_v16 }
  0x83   :  { %v1537_v19 = vsel %vm71_vm1, 1.0, %v1971_v18 }
  0x84   :  { %1676 = vmatprep.mubr.msk.f32.mxu0 %vm77_vm0, %v1537_v19 }
  0x85   :  { %v70_v20 = vpop.permute.xlu0 %69 }
  0x86   :  { %vm72_vm2 = vcmp.eq.s32.totalorder %v70_v20, %v64_v16 }
  0x87   :  { %v1538_v21 = vsel %vm72_vm2, 1.0, %v1971_v18 }
  0x88   :  { %1677 = vmatmul.mubr.msk.f32.vlgmr.msra.gmra.mrb[0].mxu0 %vm77_vm0, %v1538_v21 }
 0x15b   :  { %v1678_v23 = vpop.f32.mrb[0].mxu0 }
 0x15c   :  { %v2041_v24 = vadd.f32 %v1678_v23, %v29_v22  ;;  %v150_v25 = vpop.f32.mrb[1].mxu0 }
 0x15d   :  { %v2043_v26 = vadd.f32 %v150_v25, %v29_v22 }
 0x15e   :  { %163 = vrot.lane.b32.xlu1 %v2041_v24, %s1972_s14 }
 0x15f   :  { %167 = vrot.lane.b32.xlu0 %v2043_v26, %s1973_s15  ;;  %1683 = vmatprep.mubr.msk.f32.mxu0 %vm179_vm3, %v2043_v26  ;;  %v1817_v28 = vpack.c.bf16 %v2041_v24, %v2043_v26 }
 0x161   :  { %1819 = vmatprep.subr.msk.bf16.mxu0 %vm2048_vm4, %v1817_v28 }
 0x162   :  { %161 = vrot.lane.b32.xlu1 %v2043_v26, %s1972_s14  ;;  %1822 = vmatpush3.bf16.xpose.msk.msra.mxu0 %vm2048_vm4, %v1817_v28 }
 0x163   :  { %173 = vrot.lane.b32.xlu0 %v2043_v26, %s1974_s16 }
 0x166   :  { %169 = vrot.lane.b32.xlu1 %v2041_v24, %s1973_s15 }
 0x169   :  { %1684 = vmatmul.mubr.msk.f32.vlgmr.msra.gmra.mrb[2].mxu0 %vm179_vm3, %v2041_v24 }
 0x16a   :  { %175 = vrot.lane.b32.xlu1 %v2041_v24, %s1974_s16 }
 0x1d0   :  { %v164_v29 = vpop.permute.xlu1 %163 }
 0x1d1   :  { %v168_v30 = vpop.permute.xlu0 %167 }
 0x1d2   :  { %1697 = vmatprep.mubr.msk.f32.mxu0 %vm179_vm3, %v168_v30 }
 0x1d4   :  { %v162_v31 = vpop.permute.xlu1 %161 }
 0x1d5   :  { %v2068_v32 = vpack.c.bf16 %v164_v29, %v162_v31  ;;  %1690 = vmatprep.mubr.msk.f32.mxu1 %vm179_vm3, %v162_v31  ;;  %v174_v35 = vpop.permute.xlu0 %173 }
 0x1d7   :  { %1825 = vmatprep.subr.msk.bf16.mxu1 %vm2048_vm4, %v2068_v32 }
 0x1d8   :  { %1828 = vmatpush3.bf16.xpose.msk.msra.mxu1 %vm2048_vm4, %v2068_v32  ;;  %v170_v33 = vpop.permute.xlu1 %169 }
 0x1d9   :  { %v2077_v34 = vpack.c.bf16 %v170_v33, %v168_v30 }
 0x1db   :  { %1831 = vmatprep.subr.msk.bf16.mxu0 %vm2048_vm4, %v2077_v34 }
 0x1dc   :  { %v176_v36 = vpop.permute.xlu1 %175  ;;  %1834 = vmatpush3.bf16.xpose.msk.msra.mxu0 %vm2048_vm4, %v2077_v34 }
 0x1dd   :  { %v1835_v37 = vpack.c.bf16 %v176_v36, %v174_v35  ;;  %1842 = vmatprep.subr.bf16.mxu0 %v1817_v28 }
 0x1df   :  { %1691 = vmatmul.mubr.msk.f32.vlgmr.msra.gmra.mrb[0].mxu1 %vm179_vm3, %v164_v29  ;;  %1837 = vmatprep.subr.msk.bf16.mxu1 %vm2048_vm4, %v1835_v37 }
 0x1e0   :  { %1840 = vmatpush3.bf16.xpose.msk.msra.mxu1 %vm2048_vm4, %v1835_v37  ;;  %1704 = vmatprep.mubr.msk.f32.mxu1 %vm179_vm3, %v174_v35 }
 0x1e1   :  { %1854 = vmatprep.subr.bf16.mxu1 %v1835_v37 }
 0x1e3   :  { %1698 = vmatmul.mubr.msk.f32.vlgmr.msra.gmra.mrb[4].mxu0 %vm179_vm3, %v170_v33 }
 0x1e4   :  { %1844 = vmatpush3.bf16.msra.mxu0 %v1817_v28 }
 0x1e5   :  { %1846 = vmatprep.subr.bf16.mxu0 %v2068_v32 }
 0x1e7   :  { %1705 = vmatmul.mubr.msk.f32.vlgmr.msra.gmra.mrb[2].mxu1 %vm179_vm3, %v176_v36 }
 0x1e8   :  { %1856 = vmatpush3.bf16.msra.mxu1 %v1835_v37 }
 0x23c   :  { %v1685_v38 = vpop.f32.mrb[2].mxu0 }
 0x23d   :  { %v497_v40 = vmul.f32 0.17677669, %v1685_v38  ;;  %v250_v41 = vpop.f32.mrb[3].mxu0 }
 0x23e   :  { %v496_v43 = vmul.f32 0.17677669, %v250_v41 }
 0x23f   :  { %v507_v44 = vadd.f32 %v505_v39, %v497_v40 }
 0x240   :  { %v506_v45 = vadd.f32 %v504_v42, %v496_v43 }
 0x241   :  { %v518_v46 = vsel %vm514_vm5, %v507_v44, -inf }
 0x242   :  { %519 = vmax.xlane.f32.xlu1 %v518_v46  ;;  %v515_v47 = vsel %vm514_vm5, %v506_v45, -inf }
 0x243   :  { %516 = vmax.xlane.f32.xlu0 %v515_v47 }
 0x2b2   :  { %v1692_v48 = vpop.f32.mrb[0].mxu1 }
 0x2b3   :  { %v499_v49 = vmul.f32 0.17677669, %v1692_v48  ;;  %v329_v50 = vpop.f32.mrb[1].mxu1 }
 0x2b4   :  { %v498_v51 = vmul.f32 0.17677669, %v329_v50 }
 0x2b5   :  { %v509_v52 = vadd.f32 %v505_v39, %v499_v49 }
 0x2b6   :  { %v1699_v53 = vpop.f32.mrb[4].mxu0  ;;  %v508_v57 = vadd.f32 %v504_v42, %v498_v51 }
 0x2b7   :  { %v501_v54 = vmul.f32 0.17677669, %v1699_v53  ;;  %v408_v55 = vpop.f32.mrb[5].mxu0  ;;  %v524_v56 = vsel %vm514_vm5, %v509_v52, -inf }
 0x2b8   :  { %v500_v58 = vmul.f32 0.17677669, %v408_v55  ;;  %525 = vmax.xlane.f32.xlu0 %v524_v56  ;;  %v521_v63 = vsel %vm514_vm5, %v508_v57, -inf }
 0x2b9   :  { %v511_v0 = vadd.f32 %v505_v39, %v501_v54 }
 0x2ba   :  { %v1706_v59 = vpop.f32.mrb[2].mxu1  ;;  %v510_v60 = vadd.f32 %v504_v42, %v500_v58 }
 0x2bb   :  { %v503_v61 = vmul.f32 0.17677669, %v1706_v59  ;;  %v487_v62 = vpop.f32.mrb[3].mxu1  ;;  %v530_v4 = vsel %vm514_vm5, %v511_v0, -inf }
 0x2bc   :  { %v502_v1 = vmul.f32 0.17677669, %v487_v62  ;;  %522 = vmax.xlane.f32.xlu0 %v521_v63  ;;  %v527_v2 = vsel %vm514_vm5, %v510_v60, -inf }
 0x2bd   :  { %528 = vmax.xlane.f32.xlu1 %v527_v2  ;;  %v513_v5 = vadd.f32 %v505_v39, %v503_v61 }
 0x2be   :  { %v512_v3 = vadd.f32 %v504_v42, %v502_v1 }
 0x2bf   :  { %v536_v7 = vsel %vm514_vm5, %v513_v5, -inf }
 0x2c0   :  { %531 = vmax.xlane.f32.xlu0 %v530_v4  ;;  %v533_v6 = vsel %vm514_vm5, %v512_v3, -inf }
 0x2c1   :  { %534 = vmax.xlane.f32.xlu1 %v533_v6 }
 0x2c4   :  { %537 = vmax.xlane.f32.xlu0 %v536_v7 }
 0x2cf   :  { %v520_v8 = vpop.xlane.xlu1 %519 }
 0x2d0   :  { %v540_v9 = vsub.f32 %v507_v44, %v520_v8  ;;  %v517_v10 = vpop.xlane.xlu0 %516 }
 0x2d1   :  { %v539_v11 = vsub.f32 %v506_v45, %v517_v10 }
 0x2d2   :  { %v549_v12 = vmul.f32 1.442695, %v540_v9 }
 0x2d3   :  { %v547_v13 = vmul.f32 1.442695, %v539_v11 }
 0x2d4   :  { %1906 = vpow2.f32 %v549_v12  ;;  %v58_v12 = vld [vmem:[%s2275_s3 + $0x8] sm:$0xff] }
 0x2d5   :  { %1908 = vpow2.f32 %v547_v13  ;;  %1740 = vmatprep.subr.mxu1 %v58_v12 }
 0x2de   :  { %v1907_v14 = vpop.eup %1906 }
 0x2df   :  { %v1909_v15 = vpop.eup %1908  ;;  %v566_v16 = vsel %vm514_vm5, %v1907_v14, 0.0 }
 0x2e0   :  { %567 = vadd.xlane.f32.xlu0 %v566_v16  ;;  %v563_v17 = vsel %vm514_vm5, %v1909_v15, 0.0 }
 0x2e1   :  { %564 = vadd.xlane.f32.xlu1 %v563_v17 }
 0x345   :  { %v526_v18 = vpop.xlane.xlu0 %525 }
 0x346   :  { %v542_v19 = vsub.f32 %v509_v52, %v526_v18 }
 0x348   :  { %v553_v20 = vmul.f32 1.442695, %v542_v19 }
 0x349   :  { %v523_v21 = vpop.xlane.xlu0 %522 }
 0x34a   :  { %1910 = vpow2.f32 %v553_v20  ;;  %v541_v22 = vsub.f32 %v508_v57, %v523_v21  ;;  %v529_v23 = vpop.xlane.xlu1 %528 }
 0x34b   :  { %v543_v25 = vsub.f32 %v510_v60, %v529_v23 }
 0x34c   :  { %v551_v27 = vmul.f32 1.442695, %v541_v22 }
 0x34d   :  { %v555_v28 = vmul.f32 1.442695, %v543_v25  ;;  %v532_v29 = vpop.xlane.xlu0 %531 }
 0x34e   :  { %1912 = vpow2.f32 %v551_v27  ;;  %v544_v30 = vsub.f32 %v511_v0, %v532_v29  ;;  %v535_v31 = vpop.xlane.xlu1 %534 }
 0x34f   :  { %v545_v33 = vsub.f32 %v512_v3, %v535_v31  ;;  %1914 = vpow2.f32 %v555_v28 }
 0x350   :  { %v557_v35 = vmul.f32 1.442695, %v544_v30 }
 0x351   :  { %v559_v36 = vmul.f32 1.442695, %v545_v33  ;;  %v538_v37 = vpop.xlane.xlu0 %537 }
 0x352   :  { %1916 = vpow2.f32 %v557_v35  ;;  %v546_v38 = vsub.f32 %v513_v5, %v538_v37 }
 0x353   :  { %1918 = vpow2.f32 %v559_v36 }
 0x354   :  { %v1911_v39 = vpop.eup %1910  ;;  %v561_v40 = vmul.f32 1.442695, %v546_v38 }
 0x355   :  { %v572_v41 = vsel %vm514_vm5, %v1911_v39, 0.0 }
 0x356   :  { %1920 = vpow2.f32 %v561_v40  ;;  %573 = vadd.xlane.f32.xlu0 %v572_v41 }
 0x358   :  { %v1913_v42 = vpop.eup %1912 }
 0x359   :  { %v569_v43 = vsel %vm514_vm5, %v1913_v42, 0.0  ;;  %v1915_v44 = vpop.eup %1914 }
 0x35a   :  { %570 = vadd.xlane.f32.xlu1 %v569_v43  ;;  %v575_v47 = vsel %vm514_vm5, %v1915_v44, 0.0  ;;  %v1573_v43 = vld [vmem:[%s2274_s2 + $0x48] ss:$0 sm:$0xff] }
 0x35c   :  { %v1917_v45 = vpop.eup %1916 }
 0x35d   :  { %v578_v46 = vsel %vm514_vm5, %v1917_v45, 0.0  ;;  %v1919_v48 = vpop.eup %1918 }
 0x35e   :  { %579 = vadd.xlane.f32.xlu0 %v578_v46  ;;  %576 = vadd.xlane.f32.xlu1 %v575_v47  ;;  %v581_v51 = vsel %vm514_vm5, %v1919_v48, 0.0 }
 0x360   :  { %v1921_v49 = vpop.eup %1920 }
 0x361   :  { %v584_v50 = vsel %vm514_vm5, %v1921_v49, 0.0 }
 0x362   :  { %585 = vadd.xlane.f32.xlu0 %v584_v50  ;;  %582 = vadd.xlane.f32.xlu1 %v581_v51 }
 0x36d   :  { %v568_v52 = vpop.xlane.xlu0 %567 }
 0x36e   :  { %1922 = vrcp.f32 %v568_v52  ;;  %v565_v53 = vpop.xlane.xlu1 %564 }
 0x36f   :  { %1924 = vrcp.f32 %v565_v53 }
 0x378   :  { %v1923_v54 = vpop.eup %1922 }
 0x379   :  { %v1925_v55 = vpop.eup %1924  ;;  %v596_v57 = vmul.f32 %v1923_v54, %v1907_v14  ;;  %v60_v14 = vld [vmem:[%s2275_s3 + $0x18] sm:$0xff] }
 0x37a   :  { %v595_v56 = vmul.f32 %v1925_v55, %v1909_v15 }
 0x37c   :  { %1711 = vmatprep.mubr.msk.f32.mxu0 %vm514_vm5, %v595_v56 }
 0x37d   :  { %1712 = vmatmul.mubr.msk.f32.vlgmr.msra.gmra.mrb[6].mxu0 %vm514_vm5, %v596_v57 }
 0x37e   :  { %1848 = vmatpush3.bf16.msra.mxu0 %v2068_v32  ;;  %v57_v32 = vld [vmem:[%s2275_s3] sm:$0xff] }
 0x37f   :  { %1850 = vmatprep.subr.bf16.mxu0 %v2077_v34 }
 0x3e3   :  { %v574_v58 = vpop.xlane.xlu0 %573 }
 0x3e4   :  { %1926 = vrcp.f32 %v574_v58 }
 0x3e7   :  { %v571_v59 = vpop.xlane.xlu1 %570 }
 0x3e8   :  { %1928 = vrcp.f32 %v571_v59 }
 0x3eb   :  { %v580_v60 = vpop.xlane.xlu0 %579  ;;  %v577_v61 = vpop.xlane.xlu1 %576 }
 0x3ec   :  { %1930 = vrcp.f32 %v580_v60 }
 0x3ed   :  { %1932 = vrcp.f32 %v577_v61 }
 0x3ee   :  { %v1927_v0 = vpop.eup %1926 }
 0x3ef   :  { %v586_v62 = vpop.xlane.xlu0 %585  ;;  %v583_v63 = vpop.xlane.xlu1 %582  ;;  %v598_v3 = vmul.f32 %v1927_v0, %v1911_v39  ;;  %v53_v0 = vld [vmem:[%s2276_s4 + $0x8] sm:$0xff] }
 0x3f0   :  { %1934 = vrcp.f32 %v586_v62 }
 0x3f1   :  { %1936 = vrcp.f32 %v583_v63  ;;  %v52_v63 = vld [vmem:[%s2276_s4] sm:$0xff] }
 0x3f2   :  { %v1929_v1 = vpop.eup %1928 }
 0x3f3   :  { %v597_v2 = vmul.f32 %v1929_v1, %v1913_v42  ;;  %v1857_v1 = vpack.c.bf16 %v53_v0, %v52_v63 }
 0x3f5   :  { %1718 = vmatprep.mubr.msk.f32.mxu0 %vm514_vm5, %v597_v2  ;;  %v54_v2 = vld [vmem:[%s2276_s4 + $0x10] sm:$0xff] }
 0x3f6   :  { %v1931_v4 = vpop.eup %1930  ;;  %1719 = vmatmul.mubr.msk.f32.vlgmr.msra.gmra.mrb[8].mxu0 %vm514_vm5, %v598_v3  ;;  %v55_v3 = vld [vmem:[%s2276_s4 + $0x18] sm:$0xff] }
 0x3f7   :  { %v1933_v5 = vpop.eup %1932  ;;  %v600_v6 = vmul.f32 %v1931_v4, %v1917_v45  ;;  %1852 = vmatpush3.bf16.msra.mxu0 %v2077_v34  ;;  %v59_v34 = vld [vmem:[%s2275_s3 + $0x10] sm:$0xff] }
 0x3f8   :  { %v599_v7 = vmul.f32 %v1933_v5, %v1915_v44  ;;  %1735 = vmatprep.subr.mxu0 %v57_v32  ;;  %v36_v4 = vld [vmem:[%s2274_s2 + $0x50] sm:$0xff]  ;;  %v37_v5 = vld [vmem:[%s2274_s2 + $0x58] sm:$0xff] }
 0x3fa   :  { %v1935_v8 = vpop.eup %1934  ;;  %1725 = vmatprep.mubr.msk.f32.mxu0 %vm514_vm5, %v599_v7  ;;  %v1865_v7 = vpack.c.bf16 %v37_v5, %v36_v4 }
 0x3fb   :  { %v1937_v9 = vpop.eup %1936  ;;  %v602_v10 = vmul.f32 %v1935_v8, %v1921_v49  ;;  %1726 = vmatmul.mubr.msk.f32.vlgmr.msra.gmra.mrb[10].mxu0 %vm514_vm5, %v600_v6  ;;  %v38_v6 = vld [vmem:[%s2274_s2 + $0x60] sm:$0xff]  ;;  %v39_v8 = vld [vmem:[%s2274_s2 + $0x68] sm:$0xff] }
 0x3fc   :  { %v601_v11 = vmul.f32 %v1937_v9, %v1919_v48  ;;  %1736 = vmatpush3.msra.mxu0 %v57_v32  ;;  %v1861_v32 = vpack.c.bf16 %v55_v3, %v54_v2  ;;  %v1869_v9 = vpack.c.bf16 %v39_v8, %v38_v6 }
 0x3fd   :  { %1745 = vmatprep.subr.mxu0 %v59_v34 }
 0x3fe   :  { %1732 = vmatprep.mubr.msk.f32.mxu1 %vm514_vm5, %v601_v11  ;;  %v41_v11 = vld [vmem:[%s2274_s2 + $0x78] sm:$0xff] }
 0x3ff   :  { %1733 = vmatmul.mubr.msk.f32.vlgmr.msra.gmra.mrb[4].mxu1 %vm514_vm5, %v602_v10  ;;  %v40_v10 = vld [vmem:[%s2274_s2 + $0x70] sm:$0xff] }
 0x400   :  { %1741 = vmatpush3.msra.mxu1 %v58_v12  ;;  %v1873_v12 = vpack.c.bf16 %v41_v11, %v40_v10 }
 0x401   :  { %1750 = vmatprep.subr.mxu1 %v60_v14 }
 0x450   :  { %v1713_v13 = vpop.f32.mrb[6].mxu0 }
 0x451   :  { %v675_v15 = vpop.f32.mrb[7].mxu0 }
 0x452   :  { %1737 = vmatprep.mubr.msk.f32.mxu0 %vm179_vm3, %v675_v15  ;;  %v44_v15 = vld [vmem:[%s2274_s2 + $0x90] sm:$0xff] }
 0x453   :  { %1738 = vmatmul.mubr.msk.f32.vlgmr.msra.gmra.mrb[12].mxu0 %vm179_vm3, %v1713_v13  ;;  %v43_v13 = vld [vmem:[%s2274_s2 + $0x88] sm:$0xff] }
 0x454   :  { %1746 = vmatpush3.msra.mxu0 %v59_v34  ;;  %v42_v34 = vld [vmem:[%s2274_s2 + $0x80] sm:$0xff] }
 0x455   :  { %1858 = vmatprep.subr.bf16.mxu0 %v1857_v1 }
 0x4c9   :  { %v1720_v16 = vpop.f32.mrb[8].mxu0 }
 0x4ca   :  { %v756_v17 = vpop.f32.mrb[9].mxu0 }
 0x4cb   :  { %1742 = vmatprep.mubr.msk.f32.mxu1 %vm179_vm3, %v756_v17 }
 0x4cc   :  { %1743 = vmatmul.mubr.msk.f32.vlgmr.msra.gmra.mrb[6].mxu1 %vm179_vm3, %v1720_v16  ;;  %v45_v16 = vld [vmem:[%s2274_s2 + $0x98] sm:$0xff] }
 0x4cd   :  { %1751 = vmatpush3.msra.mxu1 %v60_v14  ;;  %v1877_v14 = vpack.c.bf16 %v43_v13, %v42_v34  ;;  %v1881_v17 = vpack.c.bf16 %v45_v16, %v44_v15  ;;  %v1580_v34 = vld [vmem:[%s2274_s2 + $0x4c] ss:$0 sm:$0xff]  ;;  %v1581_v16 = vld [vmem:[%s2274_s2 + $0x4d] ss:$0 sm:$0xff] }
 0x4ce   :  { %v1727_v18 = vpop.f32.mrb[10].mxu0  ;;  %1866 = vmatprep.subr.bf16.mxu1 %v1865_v7 }
 0x4cf   :  { %v837_v19 = vpop.f32.mrb[11].mxu0 }
 0x4d0   :  { %1747 = vmatprep.mubr.msk.f32.mxu0 %vm179_vm3, %v837_v19  ;;  %v47_v19 = vld [vmem:[%s2274_s2 + $0xa8] sm:$0xff] }
 0x4d1   :  { %1748 = vmatmul.mubr.msk.f32.vlgmr.msra.gmra.mrb[14].mxu0 %vm179_vm3, %v1727_v18  ;;  %v46_v18 = vld [vmem:[%s2274_s2 + $0xa0] sm:$0xff] }
 0x4d2   :  { %v1734_v20 = vpop.f32.mrb[4].mxu1  ;;  %1860 = vmatpush3.bf16.msra.mxu0 %v1857_v1 }
 0x4d3   :  { %v918_v21 = vpop.f32.mrb[5].mxu1  ;;  %1862 = vmatprep.subr.bf16.mxu0 %v1861_v32 }
 0x4d4   :  { %1752 = vmatprep.mubr.msk.f32.mxu1 %vm179_vm3, %v918_v21  ;;  %v48_v21 = vld [vmem:[%s2274_s2 + $0xb0] sm:$0xff] }
 0x4d5   :  { %1753 = vmatmul.mubr.msk.f32.vlgmr.msra.gmra.mrb[8].mxu1 %vm179_vm3, %v1734_v20  ;;  %v1885_v20 = vpack.c.bf16 %v47_v19, %v46_v18 }
 0x4d6   :  { %1864 = vmatpush3.bf16.msra.mxu0 %v1861_v32  ;;  %1868 = vmatpush3.bf16.msra.mxu1 %v1865_v7 }
 0x4d7   :  { %1870 = vmatprep.subr.bf16.mxu1 %v1869_v9 }
 0x4da   :  { %1872 = vmatpush3.bf16.msra.mxu1 %v1869_v9 }
 0x4db   :  { %1874 = vmatprep.subr.bf16.mxu1 %v1873_v12 }
 0x4de   :  { %1876 = vmatpush3.bf16.msra.mxu1 %v1873_v12 }
 0x4df   :  { %1878 = vmatprep.subr.bf16.mxu1 %v1877_v14 }
 0x4e2   :  { %1880 = vmatpush3.bf16.msra.mxu1 %v1877_v14 }
 0x4e3   :  { %1882 = vmatprep.subr.bf16.mxu1 %v1881_v17 }
 0x4e6   :  { %1884 = vmatpush3.bf16.msra.mxu1 %v1881_v17 }
 0x4e7   :  { %1886 = vmatprep.subr.bf16.mxu1 %v1885_v20 }
 0x4ea   :  { %1888 = vmatpush3.bf16.msra.mxu1 %v1885_v20 }
 0x526   :  { %v1739_v22 = vpop.f32.mrb[12].mxu0 }
 0x527   :  { %v999_v23 = vpop.f32.mrb[13].mxu0  ;;  %v1259_v27 = vsel %vm1251_vm6, %v1739_v22, 0.0  ;;  %v49_v22 = vld [vmem:[%s2274_s2 + $0xb8] sm:$0xff] }
 0x528   :  { %v1252_v30 = vsel %vm1251_vm6, %v999_v23, 0.0  ;;  %v1889_v23 = vpack.c.bf16 %v49_v22, %v48_v21 }
 0x52a   :  { %1890 = vmatprep.subr.bf16.mxu1 %v1889_v23 }
 0x52b   :  { %1892 = vmatpush3.bf16.msra.mxu1 %v1889_v23 }
 0x59f   :  { %v1744_v25 = vpop.f32.mrb[6].mxu1 }
 0x5a0   :  { %v1260_v28 = vsel %vm1251_vm6, %v1744_v25, 0.0  ;;  %v1080_v29 = vpop.f32.mrb[7].mxu1 }
 0x5a1   :  { %v1261_v31 = vadd.f32 %v1260_v28, %v1259_v27  ;;  %v1253_v33 = vsel %vm1251_vm6, %v1080_v29, 0.0 }
 0x5a2   :  { %v1254_v35 = vadd.f32 %v1253_v33, %v1252_v30 }
 0x5a4   :  { %v1749_v36 = vpop.f32.mrb[14].mxu0 }
 0x5a5   :  { %v1262_v37 = vsel %vm1251_vm6, %v1749_v36, 0.0  ;;  %v1161_v38 = vpop.f32.mrb[15].mxu0 }
 0x5a6   :  { %v1263_v39 = vadd.f32 %v1262_v37, %v1261_v31  ;;  %v1255_v40 = vsel %vm1251_vm6, %v1161_v38, 0.0 }
 0x5a7   :  { %v1256_v41 = vadd.f32 %v1255_v40, %v1254_v35  ;;  %v1574_v35 = vld [vmem:[%s2274_s2 + $0x49] ss:$0 sm:$0xff] }
 0x5a8   :  { %v1754_v42 = vpop.f32.mrb[8].mxu1 }
 0x5a9   :  { %v1264_v44 = vsel %vm1251_vm6, %v1754_v42, 0.0  ;;  %v1242_v45 = vpop.f32.mrb[9].mxu1 }
 0x5aa   :  { %v1265_v46 = vadd.f32 %v1264_v44, %v1263_v39  ;;  %v1257_v47 = vsel %vm1251_vm6, %v1242_v45, 0.0  ;;  %v1575_v39 = vld [vmem:[%s2274_s2 + $0x4a] ss:$0 sm:$0xff]  ;;  %v50_v44 = vld [vmem:[%s2274_s2 + $0xc0] sm:$0xff] }
 0x5ab   :  { %v1258_v48 = vadd.f32 %v1257_v47, %v1256_v41  ;;  %v51_v45 = vld [vmem:[%s2274_s2 + $0xc8] sm:$0xff]  ;;  %v1576_v47 = vld [vmem:[%s2276_s4 + $0x20] ss:$0 sm:$0xff] }
 0x5ac   :  { %v1271_v49 = vadd.f32 %v1573_v43, %v1265_v46  ;;  %v1893_v46 = vpack.c.bf16 %v51_v45, %v50_v44 }
 0x5ad   :  { %v1270_v50 = vadd.f32 %v1573_v43, %v1258_v48 }
 0x5ae   :  { %v1273_v51 = vadd.f32 %v1271_v49, %v2041_v24  ;;  %1894 = vmatprep.subr.bf16.mxu1 %v1893_v46 }
 0x5af   :  { %v1272_v52 = vadd.f32 %v1270_v50, %v2043_v26  ;;  %1896 = vmatpush3.bf16.msra.mxu1 %v1893_v46 }
 0x5b0   :  { %v1277_v53 = vsel %vm1251_vm6, %v1273_v51, 0.0 }
 0x5b1   :  { %1278 = vadd.xlane.f32.xlu0 %v1277_v53  ;;  %v1274_v54 = vsel %vm1251_vm6, %v1272_v52, 0.0 }
 0x5b2   :  { %1275 = vadd.xlane.f32.xlu1 %v1274_v54  ;;  %v1579_v54 = vld [vmem:[%s2274_s2 + $0x4b] ss:$0 sm:$0xff] }
 0x63e   :  { %v1279_v55 = vpop.xlane.xlu0 %1278 }
 0x63f   :  { %v1282_v56 = vmul.f32 0.03125, %v1279_v55  ;;  %v1276_v57 = vpop.xlane.xlu1 %1275 }
 0x640   :  { %v1281_v58 = vmul.f32 0.03125, %v1276_v57 }
 0x641   :  { %v2162_v59 = vsub.f32 %v1273_v51, %v1282_v56 }
 0x642   :  { %v2164_v60 = vsub.f32 %v1272_v52, %v1281_v58 }
 0x643   :  { %v1286_v61 = vmul.f32 %v2162_v59, %v2162_v59 }
 0x644   :  { %v1285_v24 = vmul.f32 %v2164_v60, %v2164_v60 }
 0x645   :  { %v1290_v26 = vsel %vm1251_vm6, %v1286_v61, 0.0 }
 0x646   :  { %1291 = vadd.xlane.f32.xlu0 %v1290_v26  ;;  %v1287_v62 = vsel %vm1251_vm6, %v1285_v24, 0.0 }
 0x647   :  { %1288 = vadd.xlane.f32.xlu1 %v1287_v62 }
 0x6d3   :  { %v1292_v25 = vpop.xlane.xlu0 %1291 }
 0x6d4   :  { %v1294_v27 = vmul.f32 0.03125, %v1292_v25  ;;  %v1289_v28 = vpop.xlane.xlu1 %1288 }
 0x6d5   :  { %v1293_v29 = vmul.f32 0.03125, %v1289_v28 }
 0x6d6   :  { %v1296_v30 = vadd.f32 1e-05, %v1294_v27 }
 0x6d7   :  { %v1295_v31 = vadd.f32 1e-05, %v1293_v29 }
 0x6d8   :  { %1938 = vrsqrt.f32 %v1296_v30 }
 0x6d9   :  { %1940 = vrsqrt.f32 %v1295_v31 }
 0x6e2   :  { %v1939_v33 = vpop.eup %1938 }
 0x6e3   :  { %v1941_v36 = vpop.eup %1940  ;;  %v1300_v37 = vmul.f32 %v1939_v33, %v2162_v59 }
 0x6e4   :  { %v1299_v38 = vmul.f32 %v1941_v36, %v2164_v60 }
 0x6e5   :  { %v1306_v40 = vmul.f32 %v1574_v35, %v1300_v37 }
 0x6e6   :  { %v1305_v41 = vmul.f32 %v1574_v35, %v1299_v38 }
 0x6e7   :  { %v1312_v43 = vadd.f32 %v1575_v39, %v1306_v40 }
 0x6e8   :  { %v1311_v42 = vadd.f32 %v1575_v39, %v1305_v41 }
 0x6ea   :  { %1763 = vmatprep.mubr.msk.f32.mxu0 %vm1251_vm6, %v1311_v42 }
 0x6eb   :  { %1764 = vmatmul.mubr.msk.f32.vlgmr.msra.gmra.mrb[16].mxu0 %vm1251_vm6, %v1312_v43 }
 0x7be   :  { %v1765_v48 = vpop.f32.mrb[16].mxu0 }
 0x7bf   :  { %v1395_v49 = vadd.f32 %v1765_v48, %v1576_v47  ;;  %v1389_v50 = vpop.f32.mrb[17].mxu0 }
 0x7c0   :  { %v1390_v51 = vadd.f32 %v1576_v47, %v1389_v50 }
 0x7c1   :  { %v1399_v53 = vmax.f32 %v1395_v49, 0.0 }
 0x7c2   :  { %v1398_v52 = vmax.f32 %v1390_v51, 0.0 }
 0x7c4   :  { %1798 = vmatprep.mubr.f32.mxu1 %v1398_v52 }
 0x7c5   :  { %1799 = vmatmul.mubr.f32.vlgmr.msra.gmra.mrb[10].mxu1 %v1399_v53 }
 0x898   :  { %v1800_v55 = vpop.f32.mrb[10].mxu1 }
 0x899   :  { %v1476_v56 = vadd.f32 %v1800_v55, %v1579_v54  ;;  %v1470_v57 = vpop.f32.mrb[11].mxu1 }
 0x89a   :  { %v1471_v58 = vadd.f32 %v1579_v54, %v1470_v57 }
 0x89b   :  { %v1480_v59 = vadd.f32 %v1476_v56, %v1312_v43 }
 0x89c   :  { %v1479_v60 = vadd.f32 %v1471_v58, %v1311_v42 }
 0x89d   :  { %v1484_v61 = vsel %vm1251_vm6, %v1480_v59, 0.0 }
 0x89e   :  { %1485 = vadd.xlane.f32.xlu0 %v1484_v61  ;;  %v1481_v24 = vsel %vm1251_vm6, %v1479_v60, 0.0 }
 0x89f   :  { %1482 = vadd.xlane.f32.xlu1 %v1481_v24 }
 0x92b   :  { %v1486_v26 = vpop.xlane.xlu0 %1485 }
 0x92c   :  { %v1488_v62 = vmul.f32 0.03125, %v1486_v26  ;;  %v1483_v63 = vpop.xlane.xlu1 %1482 }
 0x92d   :  { %v1487_v0 = vmul.f32 0.03125, %v1483_v63 }
 0x92e   :  { %v1490_v1 = vsub.f32 %v1480_v59, %v1488_v62 }
 0x92f   :  { %v1489_v2 = vsub.f32 %v1479_v60, %v1487_v0 }
 0x930   :  { %v1492_v3 = vmul.f32 %v1490_v1, %v1490_v1 }
 0x931   :  { %v1491_v32 = vmul.f32 %v1489_v2, %v1489_v2 }
 0x932   :  { %v1496_v4 = vsel %vm1251_vm6, %v1492_v3, 0.0 }
 0x933   :  { %1497 = vadd.xlane.f32.xlu0 %v1496_v4  ;;  %v1493_v5 = vsel %vm1251_vm6, %v1491_v32, 0.0 }
 0x934   :  { %1494 = vadd.xlane.f32.xlu1 %v1493_v5 }
 0x9c0   :  { %v1498_v6 = vpop.xlane.xlu0 %1497 }
 0x9c1   :  { %v1500_v7 = vmul.f32 0.03125, %v1498_v6  ;;  %v1495_v8 = vpop.xlane.xlu1 %1494 }
 0x9c2   :  { %v1499_v9 = vmul.f32 0.03125, %v1495_v8 }
 0x9c3   :  { %v1502_v10 = vadd.f32 1e-05, %v1500_v7 }
 0x9c4   :  { %v1501_v11 = vadd.f32 1e-05, %v1499_v9 }
 0x9c5   :  { %1942 = vrsqrt.f32 %v1502_v10 }
 0x9c6   :  { %1944 = vrsqrt.f32 %v1501_v11 }
 0x9cf   :  { %v1943_v12 = vpop.eup %1942 }
 0x9d0   :  { %v1945_v13 = vpop.eup %1944  ;;  %v1506_v14 = vmul.f32 %v1943_v12, %v1490_v1 }
 0x9d1   :  { %v1505_v15 = vmul.f32 %v1945_v13, %v1489_v2 }
 0x9d2   :  { %v1512_v17 = vmul.f32 %v1580_v34, %v1506_v14 }
 0x9d3   :  { %v1511_v18 = vmul.f32 %v1580_v34, %v1505_v15 }
 0x9d4   :  { %v1518_v19 = vadd.f32 %v1581_v16, %v1512_v17 }
 0x9d5   :  { %v1517_v20 = vadd.f32 %v1581_v16, %v1511_v18 }
 0x9d6   :  { %1520 = vst.msk [vmem:[#allocation2 + $0x8] sm:$0xff] %vm1251_vm6, %v1518_v19 }
 0x9d7   :  { %1519 = vst.msk [vmem:[#allocation2] sm:$0xff] %vm1251_vm6, %v1517_v20 }
 0x9d8   :  { %1957 = shalt.err (!%p1954_p4)
}
 0x9d9   :  { %s1958_s28 = scalar_lea.hbm %s2277_s5, 256 }
 0x9da   :  { %p1959_p5 = scmp.ne.s32.totalorder %s2277_s5, %s1958_s28  ;;  %p1962_p6 = scmp.lt.u32.totalorder %s1958_s28, %s2277_s5 }
 0x9dc   :  { %p1964_p7 = pnand %p1962_p6, %p1959_p5 }
 0x9de   :  { %1967 = shalt.err (!%p1964_p7)
}
 0x9df   :  { %s1976_s8 = smov 128   ;;  %s1977_s9 = smov 8  }
 0x9e0   :  { %1532 = dma.vmem_to_hbm [thread:$0]  %s1527_s26, 256, %s2277_s5, [#allocation3], %s1976_s8, %s1976_s8, %s1977_s9  }
 0x9e1   :  { %1968 = dma.done.wait [#allocation3], 256  }
 0x9e2   :  { %1969 = vsyncadd [#allocation3], 4294967040 }
 0x9e3   :  { %1536 = vsyncpa [#allocation3], 1 }

</bundles_post_ra>
